<compile_context>
chip_gen: v5e
topology: v5e:2x2
jax: 0.10.0
libtpu: 0.0.40
codegen_flags: <defaults>
</compile_context>

<pallas_src>
import functools

import jax
import jax.numpy as jnp
from jax import lax
from jax.experimental import pallas as pl
from jax.experimental.pallas import tpu as pltpu

WEIGHT_DTYPE = jnp.bfloat16   # MXU operand dtype; gate/elementwise math is f32


def _act(y, activation):
    if activation == "relu":
        return jnp.maximum(y, 0.0)
    if activation == "tanh":
        return jnp.tanh(y)
    return y


def _round_up(x, m):
    return (x + m - 1) // m * m


def _pick_tile(dim, candidates):
    for c in candidates:
        if dim >= c and dim % c == 0:
            return c
    return dim


# ----------------------------------------------------------------------------
# img_linear: K/N-tiled dense  y = act(x @ W + b)   (W in bf16, acc in f32)
# ----------------------------------------------------------------------------
def _dense_kernel(x_ref, w_ref, b_ref, o_ref, acc_ref, *, activation):
    k = pl.program_id(1)

    @pl.when(k == 0)
    def _():
        acc_ref[...] = jnp.zeros_like(acc_ref)

    acc_ref[...] += jnp.dot(x_ref[...].astype(w_ref.dtype), w_ref[...],
                            preferred_element_type=jnp.float32)

    @pl.when(k == pl.num_programs(1) - 1)
    def _():
        # TODO(synk): dropout -> identity (inference semantics).
        o_ref[...] = _act(acc_ref[...] + b_ref[...], activation).astype(o_ref.dtype)


def dense(x, w, b, activation=None):
    """x: (B, K) f32, w: (K, N) bf16, b: (1, N) f32 -> act(x @ w + b) f32."""
    B, K = x.shape
    N = w.shape[1]
    # Large K tiles amortize the ~0.35us/grid-step overhead on the mem-bound
    # weight stream; tn kept <= 512 so the "parallel" N axis still has >= 2
    # blocks at img_ques_dim=1024 (v7x megacore split).
    tk = _pick_tile(K, (2048, 1024, 512, 256, 128))
    tn = _pick_tile(N, (512, 256, 128))
    grid = (N // tn, K // tk)
    return pl.pallas_call(
        functools.partial(_dense_kernel, activation=activation),
        out_shape=jax.ShapeDtypeStruct((B, N), jnp.float32),
        grid=grid,
        in_specs=[
            pl.BlockSpec((B, tk), lambda n, k: (0, k)),
            pl.BlockSpec((tk, tn), lambda n, k: (k, n)),
            pl.BlockSpec((1, tn), lambda n, k: (0, n)),
        ],
        out_specs=pl.BlockSpec((B, tn), lambda n, k: (0, n)),
        scratch_shapes=[pltpu.VMEM((B, tn), jnp.float32)],
        compiler_params=pltpu.CompilerParams(
            dimension_semantics=("parallel", "arbitrary")),
    )(x, w, b)


# ----------------------------------------------------------------------------
# Fused 2-layer GRU stack (PyTorch nn.GRU semantics, gate order [r, z, n]):
#   r = sigmoid(x W_ir + b_ir + h W_hr + b_hr)
#   z = sigmoid(x W_iz + b_iz + h W_hz + b_hz)
#   n = tanh   (x W_in + b_in + r * (h W_hn + b_hn))
#   h = (1 - z) * n + z * h
# Layer-1 input projection is hoisted off the recurrence into one MXU matmul
# written to a VMEM scratch; both layers' hidden-state matmuls are fused via a
# block-diagonal weight; the serial loop is an unrolled fori_loop.
# Emits only the final hidden states of both layers: (B, 2*Hp) f32.
# ----------------------------------------------------------------------------
def _gru_stack_kernel(q2d_ref, wih1_ref, bih1_ref, whh_ref, bhh_ref,
                      wih2_ref, bih2_ref, h0_ref, h1_ref, out_ref, gx_ref):
    B, Hp = h0_ref.shape
    T = q2d_ref.shape[0] // B
    cdt = wih1_ref.dtype

    # Phase 1 (off the serial chain): input projection of ALL timesteps as a
    # single (T*B, D) x (D, 3Hp) bf16 MXU matmul, stored to VMEM scratch.
    # TODO(synk): chunk over T for production T*B (v7x 64 MiB VMEM + overlap).
    gx_ref[...] = (jnp.dot(q2d_ref[...], wih1_ref[...],
                           preferred_element_type=jnp.float32)
                   + bih1_ref[...])

    def cell(gx, gh, h):
        r = jax.nn.sigmoid(gx[:, :Hp] + gh[:, :Hp])
        z = jax.nn.sigmoid(gx[:, Hp:2 * Hp] + gh[:, Hp:2 * Hp])
        n = jnp.tanh(gx[:, 2 * Hp:] + r * gh[:, 2 * Hp:])
        return (1.0 - z) * n + z * h

    def body(t, carry):
        h0, h1 = carry
        row = pl.multiple_of(t * B, B)
        gx0 = gx_ref[pl.ds(row, B), :]
        # One (B, 2Hp) x (2Hp, 6Hp) matmul with block-diag [[whh1,0],[0,whh2]]
        # replaces two serialized hidden-state matmuls per step.
        hh = jnp.concatenate([h0, h1], axis=1).astype(cdt)
        gh = (jnp.dot(hh, whh_ref[...], preferred_element_type=jnp.float32)
              + bhh_ref[...])                                   # (B, 6Hp)
        h0n = cell(gx0, gh[:, :3 * Hp], h0)
        # Layer-2 input projection depends on the fresh layer-1 state.
        gx1 = (jnp.dot(h0n.astype(cdt), wih2_ref[...],
                       preferred_element_type=jnp.float32) + bih2_ref[...])
        h1n = cell(gx1, gh[:, 3 * Hp:], h1)
        return h0n, h1n

    h0, h1 = lax.fori_loop(0, T, body, (h0_ref[...], h1_ref[...]), unroll=True)
    out_ref[:, :Hp] = h0
    out_ref[:, Hp:] = h1


def gru_stack(q2d, p, h0p, h1p):
    """q2d: (T*B, D) time-major, bf16.  h0p/h1p: (B, Hp) f32, zero-padded.
    Returns (B, 2*Hp) = [h0_final | h1_final] (== [out0[:,-1] | out1[:,-1]]).
    TODO(synk): on v7x with large B, split the batch over a "parallel" grid
    axis; the demo B=2 precludes a meaningful split."""
    B, Hp = h0p.shape
    T = q2d.shape[0] // B
    return pl.pallas_call(
        _gru_stack_kernel,
        out_shape=jax.ShapeDtypeStruct((B, 2 * Hp), jnp.float32),
        in_specs=[pl.BlockSpec(memory_space=pltpu.MemorySpace.VMEM)] * 9,
        out_specs=pl.BlockSpec(memory_space=pltpu.MemorySpace.VMEM),
        scratch_shapes=[pltpu.VMEM((T * B, 3 * Hp), jnp.float32)],
    )(q2d, p["gru1_wih"], p["gru1_bih"], p["gru_whh_blk"], p["gru_bhh_cat"],
      p["gru2_wih"], p["gru2_bih"], h0p, h1p)


# ----------------------------------------------------------------------------
# Fused head: ques_linear(hcat) -> act -> (img * ques) -> f1 -> act -> f2,
# tiled ("parallel") over final_linear_2's output columns so w2 streams and
# v7x can split the last projection across both TensorCores.  The shared
# prefix is recomputed per block (negligible at small B, weights stay resident).
# ----------------------------------------------------------------------------
def _head_kernel(img_ref, hcat_ref, wq_ref, bq_ref, w1_ref, b1_ref,
                 w2_ref, b2_ref, o_ref, *, activation):
    q = (jnp.dot(hcat_ref[...].astype(wq_ref.dtype), wq_ref[...],
                 preferred_element_type=jnp.float32) + bq_ref[...])
    q = _act(q, activation)
    # TODO(synk): dropout -> identity (inference semantics).
    x = img_ref[...] * q
    h = (jnp.dot(x.astype(w1_ref.dtype), w1_ref[...],
                 preferred_element_type=jnp.float32) + b1_ref[...])
    h = _act(h, activation)
    o = (jnp.dot(h.astype(w2_ref.dtype), w2_ref[...],
                 preferred_element_type=jnp.float32) + b2_ref[...])
    o_ref[...] = o.astype(o_ref.dtype)


def head(img_final, hcat, wq, bq, w1, b1, w2, b2, activation):
    B = img_final.shape[0]
    IQ = wq.shape[1]
    LD = w1.shape[1]
    NA = w2.shape[1]
    Hc = hcat.shape[1]
    tn = _pick_tile(NA, (512, 256, 128))
    grid = (NA // tn,)
    return pl.pallas_call(
        functools.partial(_head_kernel, activation=activation),
        out_shape=jax.ShapeDtypeStruct((B, NA), jnp.float32),
        grid=grid,
        in_specs=[
            pl.BlockSpec((B, IQ), lambda j: (0, 0)),
            pl.BlockSpec((B, Hc), lambda j: (0, 0)),
            pl.BlockSpec((Hc, IQ), lambda j: (0, 0)),
            pl.BlockSpec((1, IQ), lambda j: (0, 0)),
            pl.BlockSpec((IQ, LD), lambda j: (0, 0)),
            pl.BlockSpec((1, LD), lambda j: (0, 0)),
            pl.BlockSpec((LD, tn), lambda j: (0, j)),
            pl.BlockSpec((1, tn), lambda j: (0, j)),
        ],
        out_specs=pl.BlockSpec((B, tn), lambda j: (0, j)),
        compiler_params=pltpu.CompilerParams(
            dimension_semantics=("parallel",)),
    )(img_final, hcat, wq, bq, w1, b1, w2, b2)


# ----------------------------------------------------------------------------
# Raw (PyTorch-layout) parameter init + one-time kernel-ready prep
# ----------------------------------------------------------------------------
def init_params(key, *, hidden, img_input_dim, ques_emb_dim, img_ques_dim,
                linear_dim, no_answers):
    ks = jax.random.split(key, 16)
    s = 0.05

    def nrm(k, shape):
        return s * jax.random.normal(k, shape, dtype=jnp.float32)

    H = hidden
    p = {}
    p["w_img"] = nrm(ks[0], (img_input_dim, img_ques_dim))
    p["b_img"] = nrm(ks[1], (1, img_ques_dim))
    # GRU layer 1: ques_emb_dim -> hidden, gates fused [r | z | n] on columns
    p["gru1_wih"] = nrm(ks[2], (ques_emb_dim, 3 * H))
    p["gru1_whh"] = nrm(ks[3], (H, 3 * H))
    p["gru1_bih"] = nrm(ks[4], (1, 3 * H))
    p["gru1_bhh"] = nrm(ks[5], (1, 3 * H))
    # GRU layer 2: hidden -> hidden
    p["gru2_wih"] = nrm(ks[6], (H, 3 * H))
    p["gru2_whh"] = nrm(ks[7], (H, 3 * H))
    p["gru2_bih"] = nrm(ks[8], (1, 3 * H))
    p["gru2_bhh"] = nrm(ks[9], (1, 3 * H))
    p["w_ques"] = nrm(ks[10], (4 * H, img_ques_dim))
    p["b_ques"] = nrm(ks[11], (1, img_ques_dim))
    p["w_f1"] = nrm(ks[12], (img_ques_dim, linear_dim))
    p["b_f1"] = nrm(ks[13], (1, linear_dim))
    p["w_f2"] = nrm(ks[14], (linear_dim, no_answers))
    p["b_f2"] = nrm(ks[15], (1, no_answers))
    return p


def _pad_gate_cols(w, H, Hp):
    """(..., 3H) -> (..., 3Hp): zero-pad each of the [r|z|n] gate blocks."""
    if Hp == H:
        return w
    pads = [(0, 0)] * (w.ndim - 1) + [(0, Hp - H)]
    return jnp.concatenate(
        [jnp.pad(w[..., g * H:(g + 1) * H], pads) for g in range(3)], axis=-1)


def prepare_params(raw, hidden):
    """One-time (per-checkpoint) prep: lane-aligned gate padding, block-diag
    hidden-state weight, ques_linear concat fold, bf16 weight cast."""
    H = hidden
    Hp = max(_round_up(H, 128), 128)
    wd = WEIGHT_DTYPE

    def pad_rows(w):
        return jnp.pad(w, ((0, Hp - H), (0, 0)))

    wih1 = _pad_gate_cols(raw["gru1_wih"], H, Hp)                 # (D, 3Hp)
    whh1 = pad_rows(_pad_gate_cols(raw["gru1_whh"], H, Hp))       # (Hp, 3Hp)
    wih2 = pad_rows(_pad_gate_cols(raw["gru2_wih"], H, Hp))       # (Hp, 3Hp)
    whh2 = pad_rows(_pad_gate_cols(raw["gru2_whh"], H, Hp))       # (Hp, 3Hp)
    bih1 = _pad_gate_cols(raw["gru1_bih"], H, Hp)
    bhh1 = _pad_gate_cols(raw["gru1_bhh"], H, Hp)
    bih2 = _pad_gate_cols(raw["gru2_bih"], H, Hp)
    bhh2 = _pad_gate_cols(raw["gru2_bhh"], H, Hp)

    # Block-diagonal [[whh1, 0], [0, whh2]] -> both layers' hidden-state
    # projections become one MXU push per recurrence step.
    whh_blk = jnp.zeros((2 * Hp, 6 * Hp), jnp.float32)
    whh_blk = whh_blk.at[:Hp, :3 * Hp].set(whh1).at[Hp:, 3 * Hp:].set(whh2)
    bhh_cat = jnp.concatenate([bhh1, bhh2], axis=1)               # (1, 6Hp)

    # ques_linear input is [out0[:,-1], out1[:,-1], h0_n, h1_n] == [a, b, a, b]
    # (single-layer unidirectional GRU: h_n == output[:, -1]), so fold the
    # duplicated halves once: W_eff = W[:2H] + W[2H:], laid out on padded rows.
    wq = raw["w_ques"]
    fold = wq[:2 * H] + wq[2 * H:]                                 # (2H, IQ)
    iq = wq.shape[1]
    wq_eff = jnp.zeros((2 * Hp, iq), jnp.float32)
    wq_eff = wq_eff.at[:H].set(fold[:H]).at[Hp:Hp + H].set(fold[H:])

    return {
        "w_img": raw["w_img"].astype(wd), "b_img": raw["b_img"],
        "gru1_wih": wih1.astype(wd), "gru1_bih": bih1,
        "gru_whh_blk": whh_blk.astype(wd), "gru_bhh_cat": bhh_cat,
        "gru2_wih": wih2.astype(wd), "gru2_bih": bih2,
        "w_ques_eff": wq_eff.astype(wd), "b_ques": raw["b_ques"],
        "w_f1": raw["w_f1"].astype(wd), "b_f1": raw["b_f1"],
        "w_f2": raw["w_f2"].astype(wd), "b_f2": raw["b_f2"],
    }


# ----------------------------------------------------------------------------
# Full forward
# ----------------------------------------------------------------------------
def vqa_baseline_forward(prep, images, questions, h0, h1, activation="relu"):
    """images: (B, img_input_dim); questions: (B, T, ques_emb_dim);
    h0, h1: (B, hidden) initial GRU hidden states (torch.randn in the module)."""
    B, T, D = questions.shape
    H = h0.shape[-1]
    Hp = prep["gru2_wih"].shape[0]

    # images_final = dropout(act(img_linear(images)))
    images_final = dense(images, prep["w_img"], prep["b_img"], activation)

    # Time-major flatten + bf16 cast fused into one XLA pass so the GRU kernel
    # projects every timestep with a single MXU matmul and reads half the bytes.
    # TODO(synk): supply questions time-major upstream to drop the reorder.
    q2d = jnp.transpose(questions, (1, 0, 2)).reshape(T * B, D)
    q2d = q2d.astype(prep["gru1_wih"].dtype)

    # Zero-pad hidden state to lane-aligned width (no-op when H % 128 == 0).
    h0p = jnp.pad(h0, ((0, 0), (0, Hp - H)))
    h1p = jnp.pad(h1, ((0, 0), (0, Hp - H)))

    hcat = gru_stack(q2d, prep, h0p, h1p)                         # (B, 2*Hp)

    # ques_linear -> act -> (img * ques) -> f1 -> act -> f2, fused + N-tiled
    return head(images_final, hcat, prep["w_ques_eff"], prep["b_ques"],
                prep["w_f1"], prep["b_f1"], prep["w_f2"], prep["b_f2"],
                activation)


# ----------------------------------------------------------------------------
# Pure-JAX reference (original un-folded, un-padded structure)
# ----------------------------------------------------------------------------
def _ref_gru(q_tm, wih, whh, bih, bhh, h0):
    H = h0.shape[-1]

    def step(h, x):
        gx = x @ wih + bih
        gh = h @ whh + bhh
        r = jax.nn.sigmoid(gx[:, :H] + gh[:, :H])
        z = jax.nn.sigmoid(gx[:, H:2 * H] + gh[:, H:2 * H])
        n = jnp.tanh(gx[:, 2 * H:] + r * gh[:, 2 * H:])
        h_new = (1.0 - z) * n + z * h
        return h_new, h_new

    _, outs = jax.lax.scan(step, h0, q_tm)
    return outs


def _ref_forward(p, images, questions, h0, h1, activation="relu", quantize=True):
    """Follows the original module exactly.  With quantize=True the weights are
    rounded through bf16 so the comparison isolates kernel mechanics from the
    (intentional) bf16 weight quantization."""
    q = ((lambda w: w.astype(WEIGHT_DTYPE).astype(jnp.float32)) if quantize
         else (lambda w: w))
    act = lambda y: _act(y, activation)
    img_f = act(images @ q(p["w_img"]) + p["b_img"])
    q_tm = jnp.transpose(questions, (1, 0, 2))
    o0 = _ref_gru(q_tm, q(p["gru1_wih"]), q(p["gru1_whh"]), p["gru1_bih"],
                  p["gru1_bhh"], h0)
    o1 = _ref_gru(o0, q(p["gru2_wih"]), q(p["gru2_whh"]), p["gru2_bih"],
                  p["gru2_bhh"], h1)
    cat = jnp.concatenate([o0[-1], o1[-1], o0[-1], o1[-1]], axis=1)
    ques_f = act(cat @ q(p["w_ques"]) + p["b_ques"])
    x = img_f * ques_f
    x = act(x @ q(p["w_f1"]) + p["b_f1"])
    return x @ q(p["w_f2"]) + p["b_f2"]


# ----------------------------------------------------------------------------
if __name__ == "__main__":
    # Small shapes consistent with the module's structure.
    B, T = 2, 8
    HIDDEN = 32
    IMG_INPUT_DIM = 128   # stand-in for 4096 (vgg) / 2048 (resnet)
    QUES_EMB_DIM = 64     # stand-in for 300 (glove)
    IMG_QUES_DIM = 64     # stand-in for 1024
    LINEAR_DIM = 64       # stand-in for 1000
    NO_ANSWERS = 32       # stand-in for 1000 answers

    key = jax.random.PRNGKey(0)
    k_params, k_img, k_q, k_h0, k_h1 = jax.random.split(key, 5)

    raw = init_params(
        k_params, hidden=HIDDEN, img_input_dim=IMG_INPUT_DIM,
        ques_emb_dim=QUES_EMB_DIM, img_ques_dim=IMG_QUES_DIM,
        linear_dim=LINEAR_DIM, no_answers=NO_ANSWERS)
    prep = prepare_params(raw, HIDDEN)   # one-time, hoisted out of the forward

    images = jax.random.normal(k_img, (B, IMG_INPUT_DIM), dtype=jnp.float32)
    questions = jax.random.normal(k_q, (B, T, QUES_EMB_DIM), dtype=jnp.float32)
    # init_h in the original module is torch.randn -> deterministic randn here
    h0 = jax.random.normal(k_h0, (B, HIDDEN), dtype=jnp.float32)
    h1 = jax.random.normal(k_h1, (B, HIDDEN), dtype=jnp.float32)

    logits = vqa_baseline_forward(prep, images, questions, h0, h1,
                                  activation="relu")
    logits = jax.block_until_ready(logits)

    ref = _ref_forward(raw, images, questions, h0, h1, activation="relu",
                       quantize=True)
    assert logits.shape == (B, NO_ANSWERS)
    assert jnp.allclose(logits, ref, atol=1e-2, rtol=1e-2), "mismatch vs reference"

    print("KERNEL_OK")
</pallas_src>

<mosaic_0001>
module attributes {stable_mosaic.version = 11 : i64} {
  func.func @_dense_kernel(%arg0: i32, %arg1: i32, %arg2: memref<2x128xf32, #tpu.memory_space<vmem>>, %arg3: memref<128x64xbf16, #tpu.memory_space<vmem>>, %arg4: memref<1x64xf32, #tpu.memory_space<vmem>>, %arg5: memref<2x64xf32, #tpu.memory_space<vmem>>, %arg6: memref<2x64xf32, #tpu.memory_space<vmem>>) attributes {dimension_semantics = [#tpu.dimension_semantics<parallel>, #tpu.dimension_semantics<arbitrary>], iteration_bounds = array<i64: 1, 1>, scalar_prefetch = 0 : i64, scratch_operands = 1 : i64, tpu.core_type = #tpu.core_type<tc>, window_params = [{transform_indices = @transform_0, window_bounds = array<i64: 2, 128>}, {transform_indices = @transform_1, window_bounds = array<i64: 128, 64>}, {transform_indices = @transform_2, window_bounds = array<i64: 1, 64>}, {transform_indices = @transform_3, window_bounds = array<i64: 2, 64>}]} {
    %c0_i32 = arith.constant 0 : i32
    %0 = arith.cmpi eq, %arg1, %c0_i32 : i32
    %1 = arith.extui %0 : i1 to i32
    %c0_i32_0 = arith.constant 0 : i32
    %2 = arith.cmpi ne, %1, %c0_i32_0 : i32
    scf.if %2 {
      %cst_10 = arith.constant 0.000000e+00 : f32
      %13 = vector.broadcast %cst_10 : f32 to vector<2x64xf32>
      %c0_11 = arith.constant 0 : index
      %c0_12 = arith.constant 0 : index
      %14 = vector.load %arg6[%c0_11, %c0_12] : memref<2x64xf32, #tpu.memory_space<vmem>>, vector<2x64xf32>
      tpu.vector_store %arg6[%c0_11, %c0_12], %13 {strides = array<i32>} : memref<2x64xf32, #tpu.memory_space<vmem>>, vector<2x64xf32>,
    } else {
    }
    %c0 = arith.constant 0 : index
    %c0_1 = arith.constant 0 : index
    %3 = vector.load %arg6[%c0, %c0_1] : memref<2x64xf32, #tpu.memory_space<vmem>>, vector<2x64xf32>
    %c0_2 = arith.constant 0 : index
    %c0_3 = arith.constant 0 : index
    %4 = vector.load %arg2[%c0_2, %c0_3] : memref<2x128xf32, #tpu.memory_space<vmem>>, vector<2x128xf32>
    %5 = arith.truncf %4 : vector<2x128xf32> to vector<2x128xbf16>
    %c0_4 = arith.constant 0 : index
    %c0_5 = arith.constant 0 : index
    %6 = vector.load %arg3[%c0_4, %c0_5] : memref<128x64xbf16, #tpu.memory_space<vmem>>, vector<128x64xbf16>
    %cst = arith.constant dense<0.000000e+00> : vector<2x64xf32>
    %7 = tpu.matmul %5, %6, %cst {dimension_numbers = #tpu.dot_dimension_numbers<[1], [0], [0], [1], [0, 0, 1, 1], [], []>} : vector<2x128xbf16>, vector<128x64xbf16>, vector<2x64xf32> -> vector<2x64xf32>
    %8 = arith.addf %3, %7 : vector<2x64xf32>
    %c0_6 = arith.constant 0 : index
    %c0_7 = arith.constant 0 : index
    %9 = vector.load %arg6[%c0_6, %c0_7] : memref<2x64xf32, #tpu.memory_space<vmem>>, vector<2x64xf32>
    tpu.vector_store %arg6[%c0_6, %c0_7], %8 {strides = array<i32>} : memref<2x64xf32, #tpu.memory_space<vmem>>, vector<2x64xf32>,
    %c0_i32_8 = arith.constant 0 : i32
    %10 = arith.cmpi eq, %arg1, %c0_i32_8 : i32
    %11 = arith.extui %10 : i1 to i32
    %c0_i32_9 = arith.constant 0 : i32
    %12 = arith.cmpi ne, %11, %c0_i32_9 : i32
    scf.if %12 {
      %c0_10 = arith.constant 0 : index
      %c0_11 = arith.constant 0 : index
      %13 = vector.load %arg6[%c0_10, %c0_11] : memref<2x64xf32, #tpu.memory_space<vmem>>, vector<2x64xf32>
      %c0_12 = arith.constant 0 : index
      %c0_13 = arith.constant 0 : index
      %14 = vector.load %arg4[%c0_12, %c0_13] : memref<1x64xf32, #tpu.memory_space<vmem>>, vector<1x64xf32>
      %15 = vector.broadcast %14 : vector<1x64xf32> to vector<2x64xf32>
      %16 = arith.addf %13, %15 : vector<2x64xf32>
      %cst_14 = arith.constant 0.000000e+00 : f32
      %17 = vector.broadcast %cst_14 : f32 to vector<2x64xf32>
      %18 = arith.maximumf %16, %17 : vector<2x64xf32>
      %c0_15 = arith.constant 0 : index
      %c0_16 = arith.constant 0 : index
      %19 = vector.load %arg5[%c0_15, %c0_16] : memref<2x64xf32, #tpu.memory_space<vmem>>, vector<2x64xf32>
      tpu.vector_store %arg5[%c0_15, %c0_16], %18 {strides = array<i32>} : memref<2x64xf32, #tpu.memory_space<vmem>>, vector<2x64xf32>,
    } else {
    }
    return
  }
  func.func @transform_0(%arg0: i32, %arg1: i32) -> (i32, i32) {
    %c0_i32 = arith.constant 0 : i32
    %c0_i32_0 = arith.constant 0 : i32
    return %c0_i32, %arg1 : i32, i32
  }
  func.func @transform_1(%arg0: i32, %arg1: i32) -> (i32, i32) {
    %c0_i32 = arith.constant 0 : i32
    return %arg1, %arg0 : i32, i32
  }
  func.func @transform_2(%arg0: i32, %arg1: i32) -> (i32, i32) {
    %c0_i32 = arith.constant 0 : i32
    %c0_i32_0 = arith.constant 0 : i32
    return %c0_i32, %arg0 : i32, i32
  }
  func.func @transform_3(%arg0: i32, %arg1: i32) -> (i32, i32) {
    %c0_i32 = arith.constant 0 : i32
    %c0_i32_0 = arith.constant 0 : i32
    return %c0_i32, %arg0 : i32, i32
  }
}

</mosaic_0001>

<bundles_post_ra>
// kernel: tpu_custom_call.1
= control target key start
LH: loop header
LB: loop body
LE: loop exit
PB: predicated region body
PF: predicated region fallthrough
CT: control target
= control target key end

     0   :  { %vm19_vm0 = vcmask 517120   ;;  %v200_v2 = vmov 0.0   ;;  %s258_s0 = inlined_call_operand.vmem [shape: f32[2,128], index: 0, kind: input, shape index: {}]   ;;  %s259_s1 = inlined_call_operand.vmem [shape: bf16[128,64], index: 1, kind: input, shape index: {}]   ;;  %s260_s2 = inlined_call_operand.vmem [shape: f32[1,64], index: 2, kind: input, shape index: {}]   ;;  %s261_s3 = inlined_call_operand.hbm [shape: f32[2,64], index: 3, kind: output, shape index: {}]  }
   0x1   :  { %v170_v0 = vld [vmem:[%s259_s1 + $0x38] sm:$0xff]  ;;  %v169_v1 = vld [vmem:[%s259_s1 + $0x30] sm:$0xff]  ;;  %20 = vst.msk [vmem:[#allocation2] sm:$0x3] %vm19_vm0, %v200_v2 }
   0x2   :  { %88 = vmatpush.bf16.msra.mxu0 %v170_v0 }
   0x3   :  { %8 = vsyncpa [#allocation4], 0  ;;  %v168_v3 = vld [vmem:[%s259_s1 + $0x28] sm:$0xff]  ;;  %v167_v4 = vld [vmem:[%s259_s1 + $0x20] sm:$0xff]  ;;  %s201_s5 = smov [#allocation3]  }
   0x4   :  { %v166_v5 = vld [vmem:[%s259_s1 + $0x18] sm:$0xff]  ;;  %v165_v6 = vld [vmem:[%s259_s1 + $0x10] sm:$0xff]  ;;  %v164_v7 = vld [vmem:[%s259_s1 + $0x8] sm:$0xff] }
   0x5   :  { %v163_v8 = vld [vmem:[%s259_s1] sm:$0xff]  ;;  %s120_s1 = sshll.u32 %s201_s5, 4  ;;  %s121_s1 = int_to_ptr.vmem [resolvable:$true] %s120_s1 }
   0x6   :  { %89 = vmatpush.bf16.msra.mxu0 %v169_v1  ;;  %v22_v9 = vld [vmem:[%s258_s0] sm:$0x3]  ;;  %s122_s0 = sshll.u32 %s261_s3, 4  ;;  %s123_s0 = int_to_ptr.hbm [resolvable:$true] %s122_s0 }
   0x7   :  { %v23_v10 = vpack.c.bf16 %v22_v9, %v22_v9  ;;  %v173_v14 = vld [vmem:[%s260_s2] ss:$0 sm:$0xff] }
   0x8   :  { %v21_v11 = vld [vmem:[#allocation2] sm:$0x3] }
   0xa   :  { %90 = vmatpush.bf16.msra.mxu0 %v168_v3 }
   0xe   :  { %91 = vmatpush.bf16.msra.mxu0 %v167_v4 }
  0x12   :  { %92 = vmatpush.bf16.msra.mxu0 %v166_v5 }
  0x16   :  { %93 = vmatpush.bf16.msra.mxu0 %v165_v6 }
  0x1a   :  { %94 = vmatpush.bf16.msra.mxu0 %v164_v7 }
  0x1e   :  { %95 = vmatpush.bf16.msra.mxu0 %v163_v8 }
  0x21   :  { %96 = vmatmul.bf16.vlgmr.msra.gmra.mxu0 %v23_v10 }
  0x9e   :  { %v97_v12 = vpop.f32.mrf.mxu0 }
  0x9f   :  { %v101_v13 = vadd.f32 %v97_v12, %v21_v11 }
  0xa1   :  { %103 = vst.msk [vmem:[#allocation2] sm:$0x3] %vm19_vm0, %v101_v13 }
  0xa6   :  { %v99_v15 = vpop.f32.mrf.mxu0 }
  0xa8   :  { %v107_v16 = vld [vmem:[#allocation2] sm:$0x3] }
  0xa9   :  { %v112_v17 = vadd.f32 %v173_v14, %v107_v16 }
  0xab   :  { %v113_v18 = vmax.f32 %v112_v17, 0.0 }
  0xad   :  { %114 = vst.msk [vmem:[#allocation3] sm:$0x3] %vm19_vm0, %v113_v18 }
  0xae   :  { %125 = dma.vmem_to_hbm [thread:$0]  %s121_s1, 32, %s123_s0, [#allocation4]  }
  0xaf   :  { %198 = dma.done.wait [#allocation4], 32  }
  0xb0   :  { %199 = vsyncadd [#allocation4], 4294967264 }
  0xb1   :  { %130 = vsyncpa [#allocation4], 1 }

</bundles_post_ra>
